<compile_context>
chip_gen: v7x
topology: tpu7x:2x2x1
jax: 0.10.0
libtpu: 0.0.40
codegen_flags: <defaults>
</compile_context>

<pallas_src>
import numpy as np
import jax
import jax.numpy as jnp
from jax.experimental import pallas as pl
from jax.experimental.pallas import tpu as pltpu

NQ = 4                 # num_qubits
DIM = 1 << NQ          # 16 amplitudes
PDIM = 2 * DIM         # 32 packed [re | im]
NLAYERS = 4            # 8*NQ params -> 4 (embedding, ansatz) blocks
STATE_DIM = 4          # CartPole state dim
N_ACTIONS = 2          # CartPole actions
BATCH = 8


def _bit(idx, wire):
    return (idx >> (NQ - 1 - wire)) & 1


def _build_rx_mix_mats():
    """Packed RX mixing matrices M_w (32,32):  [re|im] @ M_w = [im@S_w, -re@S_w],
    where S_w is the bit-w swap permutation (partner gather)."""
    mats = np.zeros((NQ, PDIM, PDIM), np.float32)
    for w in range(NQ):
        m = 1 << (NQ - 1 - w)
        S = np.zeros((DIM, DIM), np.float32)
        for j in range(DIM):
            S[j ^ m, j] = 1.0                    # (row_vec @ S)[:, j] = row_vec[:, j^m]
        mats[w, DIM:, :DIM] = S                  # im block -> re output
        mats[w, :DIM, DIM:] = -S                 # re block -> im output (negated)
    return mats


Z_MAT = np.array([[1.0 - 2.0 * _bit(i, w) for w in range(NQ)]
                  for i in range(DIM)], np.float32)              # (16, 4)
Z_PACK = np.concatenate([Z_MAT, Z_MAT], axis=0)                  # (32, 4): re^2+im^2 readout


# ----------------------------------------------------------------------------
# Pallas kernel: encoding trig + statevector evolution + <Z> + ReLU + Linear head
# ----------------------------------------------------------------------------
def vqc_dqn_kernel(x_ref, ew_ref, m_ref, au_ref, z_ref, wt_ref, b_ref, q_ref):
    B = x_ref.shape[0]

    # EncodingLayer + RX half-angle trig, fused in-kernel (EUP transcendentals)
    xe = jnp.pi * jnp.tanh(ew_ref[...] * x_ref[...])             # (B, 4) in [-pi, pi]
    ca = jnp.cos(0.5 * xe)                                       # (B, 4)
    sa = jnp.sin(0.5 * xe)                                       # (B, 4)

    # |0000> for every sample, packed [re | im]: column 0 == 1
    col = jax.lax.broadcasted_iota(jnp.int32, (B, PDIM), 1)
    state = jnp.where(col == 0, 1.0, 0.0).astype(jnp.float32)

    # hoist constants / per-wire coefficients out of the gate loops
    mix = [m_ref[w] for w in range(NQ)]                          # 4 x (32, 32)
    cw = [ca[:, w:w + 1] for w in range(NQ)]                     # 4 x (B, 1)
    sw = [sa[:, w:w + 1] for w in range(NQ)]

    for layer in range(NLAYERS):
        # data re-uploading: RX(x_e[w]) on each wire -- ONE matmul per wire
        for w in range(NQ):
            state = cw[w] * state + sw[w] * jnp.dot(
                state, mix[w], preferred_element_type=jnp.float32)
        # parameter-only ansatz (RY, RZ, CNOT ring) pre-composed on the host into a
        # single real (32,32) block matrix [[Ar,Ai],[-Ai,Ar]] -- ONE matmul per layer
        state = jnp.dot(state, au_ref[layer], preferred_element_type=jnp.float32)

    # <Z_w> = sum_idx (re^2 + im^2) * (+/-1), folded into one (B,32)@(32,4) matmul
    expz = jnp.dot(state * state, z_ref[...], preferred_element_type=jnp.float32)

    # fc_out: ReLU + Linear(4 -> n_actions)
    h = jnp.maximum(expz, 0.0)
    q_ref[...] = (jnp.dot(h, wt_ref[...], preferred_element_type=jnp.float32)
                  + b_ref[...])


# ----------------------------------------------------------------------------
# Host-side parameter setup (pure glue; like folding BN into conv weights)
# ----------------------------------------------------------------------------
def _ry(t):
    c, s = np.cos(t / 2), np.sin(t / 2)
    return np.array([[c, -s], [s, c]], np.complex128)


def _rz(t):
    return np.array([[np.exp(-1j * t / 2), 0], [0, np.exp(1j * t / 2)]], np.complex128)


def _rx(t):
    c, s = np.cos(t / 2), np.sin(t / 2)
    return np.array([[c, -1j * s], [-1j * s, c]], np.complex128)


def _kron_all(mats):
    out = mats[0]
    for m in mats[1:]:
        out = np.kron(out, m)
    return out


def _cnot_unitary(c, t):
    U = np.zeros((DIM, DIM), np.complex128)
    mc = 1 << (NQ - 1 - c)
    mt = 1 << (NQ - 1 - t)
    for j in range(DIM):
        k = j ^ mt if (j & mc) else j
        U[k, j] = 1.0
    return U


def build_ansatz_unitaries_packed(qparams_np):
    """Pre-compose RY / RZ / CNOT-ring of each layer into one 16x16 unitary, transpose
    for row-vector states, and pack into the real (32,32) block form."""
    packed = []
    for layer in range(NLAYERS):
        p = qparams_np[8 * layer: 8 * layer + 8]
        Uy = _kron_all([_ry(p[w]) for w in range(NQ)])           # wire 0 = MSB
        Dz = _kron_all([_rz(p[w + NQ]) for w in range(NQ)])
        U = Dz @ Uy
        for i in range(NQ):                                      # CNOT ring, circuit order
            c = (NQ - 2 - i) % NQ
            t = (NQ - 1 - i) % NQ
            U = _cnot_unitary(c, t) @ U
        A = U.T                                                  # row_vec @ U^T == (U @ col)^T
        Ar, Ai = np.real(A), np.imag(A)
        packed.append(np.block([[Ar, Ai], [-Ai, Ar]]))           # (32, 32)
    return np.stack(packed).astype(np.float32)                   # (NLAYERS, 32, 32)


# ----------------------------------------------------------------------------
# Wrapper
# ----------------------------------------------------------------------------
def quantum_dqn_forward(x, emb_w2, mix_mats, ansatz_packed, z_pack, fc_wT, fc_b2,
                        *, batch_tile=128):
    B = x.shape[0]
    A = fc_wT.shape[1]
    bt = min(batch_tile, B)
    Bp = pl.cdiv(B, bt) * bt
    if Bp != B:
        x = jnp.concatenate([x, jnp.zeros((Bp - B, x.shape[1]), x.dtype)], axis=0)

    n_matmul = NLAYERS * (NQ + 1)                                 # 20 x (bt,32)@(32,32)
    flops = 2 * Bp * (n_matmul * PDIM * PDIM + PDIM * NQ + NQ * A) + 6 * Bp * PDIM * n_matmul
    bytes_accessed = 4 * (Bp * (STATE_DIM + A) + (NQ + NLAYERS) * PDIM * PDIM
                          + PDIM * NQ + NQ * A + A + STATE_DIM)
    cost = pl.CostEstimate(flops=flops, transcendentals=3 * Bp * NQ,
                           bytes_accessed=bytes_accessed)

    out = pl.pallas_call(
        vqc_dqn_kernel,
        out_shape=jax.ShapeDtypeStruct((Bp, A), jnp.float32),
        grid=(Bp // bt,),
        in_specs=[
            pl.BlockSpec((bt, STATE_DIM), lambda i: (i, 0)),          # x
            pl.BlockSpec((1, STATE_DIM), lambda i: (0, 0)),           # encoding weights
            pl.BlockSpec((NQ, PDIM, PDIM), lambda i: (0, 0, 0)),      # RX mixing mats
            pl.BlockSpec((NLAYERS, PDIM, PDIM), lambda i: (0, 0, 0)), # packed ansatz
            pl.BlockSpec((PDIM, NQ), lambda i: (0, 0)),               # Z readout
            pl.BlockSpec((NQ, A), lambda i: (0, 0)),                  # fc weight^T
            pl.BlockSpec((1, A), lambda i: (0, 0)),                   # fc bias
        ],
        out_specs=pl.BlockSpec((bt, A), lambda i: (i, 0)),
        compiler_params=pltpu.CompilerParams(dimension_semantics=("parallel",)),
        cost_estimate=cost,
    )(x, emb_w2, mix_mats, ansatz_packed, z_pack, fc_wT, fc_b2)
    return out[:B]


# ----------------------------------------------------------------------------
# Pure-numpy reference (gate-by-gate statevector) for verification
# ----------------------------------------------------------------------------
def _apply_1q(state, U, wire):
    st = state.reshape((2,) * NQ)
    st = np.moveaxis(st, wire, 0).reshape(2, -1)
    st = U @ st
    return np.moveaxis(st.reshape((2,) * NQ), 0, wire).reshape(-1)


def _apply_cnot(state, c, t):
    st = state.reshape((2,) * NQ).copy()
    sel = [slice(None)] * NQ
    sel[c] = 1
    sub = st[tuple(sel)]
    t2 = t if t < c else t - 1
    st[tuple(sel)] = np.flip(sub, axis=t2)
    return st.reshape(-1)


def ref_forward(x, emb_w, qparams, fc_w, fc_b):
    outs = []
    for i in range(x.shape[0]):
        xe = np.pi * np.tanh(emb_w * x[i])
        state = np.zeros(DIM, np.complex128)
        state[0] = 1.0
        for layer in range(NLAYERS):
            p = qparams[8 * layer: 8 * layer + 8]
            for w in range(NQ):
                state = _apply_1q(state, _rx(xe[w]), w)
            for w in range(NQ):
                state = _apply_1q(state, _ry(p[w]), w)
            for w in range(NQ):
                state = _apply_1q(state, _rz(p[w + NQ]), w)
            for g in range(NQ):
                state = _apply_cnot(state, (NQ - 2 - g) % NQ, (NQ - 1 - g) % NQ)
        probs = np.abs(state) ** 2
        expz = probs @ Z_MAT.astype(np.float64)
        outs.append(np.maximum(expz, 0.0) @ fc_w.T + fc_b)
    return np.stack(outs)


# ----------------------------------------------------------------------------
if __name__ == "__main__":
    key = jax.random.PRNGKey(0)
    k_x, k_emb, k_q, k_w, k_b = jax.random.split(key, 5)

    # deterministic inputs / parameters
    x = jax.random.normal(k_x, (BATCH, STATE_DIM), jnp.float32)
    emb_w = jax.random.uniform(k_emb, (STATE_DIM,), jnp.float32, -1.0, 1.0)
    qparams = 0.1 * jax.random.normal(k_q, (8 * NQ,), jnp.float32)
    bound = 1.0 / np.sqrt(NQ)
    fc_w = jax.random.uniform(k_w, (N_ACTIONS, NQ), jnp.float32, -bound, bound)
    fc_b = jax.random.uniform(k_b, (N_ACTIONS,), jnp.float32, -bound, bound)

    # parameter setup (glue): packed per-layer ansatz unitaries + constant operators
    mix_mats = jnp.asarray(_build_rx_mix_mats())                              # (4, 32, 32)
    ansatz_packed = jnp.asarray(
        build_ansatz_unitaries_packed(np.asarray(qparams, np.float64)))      # (4, 32, 32)
    z_pack = jnp.asarray(Z_PACK)                                              # (32, 4)
    emb_w2 = jnp.asarray(np.asarray(emb_w)[None, :])                          # (1, 4)
    fc_wT = jnp.asarray(np.asarray(fc_w).T)                                   # (4, 2)
    fc_b2 = jnp.asarray(np.asarray(fc_b)[None, :])                            # (1, 2)

    q_values = quantum_dqn_forward(x, emb_w2, mix_mats, ansatz_packed,
                                   z_pack, fc_wT, fc_b2)
    q_values = jax.block_until_ready(q_values)

    ref = ref_forward(np.asarray(x, np.float64), np.asarray(emb_w, np.float64),
                      np.asarray(qparams, np.float64), np.asarray(fc_w, np.float64),
                      np.asarray(fc_b, np.float64))
    np.testing.assert_allclose(np.asarray(q_values), ref, rtol=1e-3, atol=1e-3)

    print("KERNEL_OK")
</pallas_src>

<mosaic_0001>
module attributes {stable_mosaic.version = 11 : i64} {
  func.func @vqc_dqn_kernel(%arg0: i32, %arg1: memref<8x4xf32, #tpu.memory_space<vmem>>, %arg2: memref<1x4xf32, #tpu.memory_space<vmem>>, %arg3: memref<4x32x32xf32, #tpu.memory_space<vmem>>, %arg4: memref<4x32x32xf32, #tpu.memory_space<vmem>>, %arg5: memref<32x4xf32, #tpu.memory_space<vmem>>, %arg6: memref<4x2xf32, #tpu.memory_space<vmem>>, %arg7: memref<1x2xf32, #tpu.memory_space<vmem>>, %arg8: memref<8x2xf32, #tpu.memory_space<vmem>>) attributes {dimension_semantics = [#tpu.dimension_semantics<parallel>], iteration_bounds = array<i64: 1>, scalar_prefetch = 0 : i64, scratch_operands = 0 : i64, tpu.core_type = #tpu.core_type<tc>, window_params = [{transform_indices = @transform_0, window_bounds = array<i64: 8, 4>}, {pipeline_mode = #tpu.pipeline_mode<synchronous>, transform_indices = @transform_1, window_bounds = array<i64: 1, 4>}, {pipeline_mode = #tpu.pipeline_mode<synchronous>, transform_indices = @transform_2, window_bounds = array<i64: 4, 32, 32>}, {pipeline_mode = #tpu.pipeline_mode<synchronous>, transform_indices = @transform_3, window_bounds = array<i64: 4, 32, 32>}, {pipeline_mode = #tpu.pipeline_mode<synchronous>, transform_indices = @transform_4, window_bounds = array<i64: 32, 4>}, {pipeline_mode = #tpu.pipeline_mode<synchronous>, transform_indices = @transform_5, window_bounds = array<i64: 4, 2>}, {pipeline_mode = #tpu.pipeline_mode<synchronous>, transform_indices = @transform_6, window_bounds = array<i64: 1, 2>}, {transform_indices = @transform_7, window_bounds = array<i64: 8, 2>}]} {
    %c0 = arith.constant 0 : index
    %c0_0 = arith.constant 0 : index
    %0 = vector.load %arg2[%c0, %c0_0] : memref<1x4xf32, #tpu.memory_space<vmem>>, vector<1x4xf32>
    %c0_1 = arith.constant 0 : index
    %c0_2 = arith.constant 0 : index
    %1 = vector.load %arg1[%c0_1, %c0_2] : memref<8x4xf32, #tpu.memory_space<vmem>>, vector<8x4xf32>
    %2 = vector.broadcast %0 : vector<1x4xf32> to vector<8x4xf32>
    %3 = arith.mulf %2, %1 : vector<8x4xf32>
    %4 = math.tanh %3 : vector<8x4xf32>
    %cst = arith.constant 3.14159274 : f32
    %5 = vector.broadcast %cst : f32 to vector<8x4xf32>
    %6 = arith.mulf %5, %4 : vector<8x4xf32>
    %cst_3 = arith.constant 5.000000e-01 : f32
    %7 = vector.broadcast %cst_3 : f32 to vector<8x4xf32>
    %8 = arith.mulf %7, %6 : vector<8x4xf32>
    %9 = math.cos %8 : vector<8x4xf32>
    %cst_4 = arith.constant 5.000000e-01 : f32
    %10 = vector.broadcast %cst_4 : f32 to vector<8x4xf32>
    %11 = arith.mulf %10, %6 : vector<8x4xf32>
    %12 = math.sin %11 : vector<8x4xf32>
    %13 = tpu.iota {dimensions = array<i32: 1>} : vector<8x32xi32>
    %c0_i32 = arith.constant 0 : i32
    %14 = vector.broadcast %c0_i32 : i32 to vector<8x32xi32>
    %15 = arith.cmpi eq, %13, %14 : vector<8x32xi32>
    %cst_5 = arith.constant 1.000000e+00 : f32
    %cst_6 = arith.constant 0.000000e+00 : f32
    %16 = vector.broadcast %cst_5 : f32 to vector<8x32xf32>
    %17 = vector.broadcast %cst_6 : f32 to vector<8x32xf32>
    %18 = arith.select %15, %16, %17 : vector<8x32xi1>, vector<8x32xf32>
    %c0_7 = arith.constant 0 : index
    %c0_8 = arith.constant 0 : index
    %c0_9 = arith.constant 0 : index
    %19 = vector.load %arg3[%c0_7, %c0_8, %c0_9] : memref<4x32x32xf32, #tpu.memory_space<vmem>>, vector<1x32x32xf32>
    %20 = vector.shape_cast %19 : vector<1x32x32xf32> to vector<32x32xf32>
    %c1 = arith.constant 1 : index
    %c0_10 = arith.constant 0 : index
    %c0_11 = arith.constant 0 : index
    %21 = vector.load %arg3[%c1, %c0_10, %c0_11] : memref<4x32x32xf32, #tpu.memory_space<vmem>>, vector<1x32x32xf32>
    %22 = vector.shape_cast %21 : vector<1x32x32xf32> to vector<32x32xf32>
    %c2 = arith.constant 2 : index
    %c0_12 = arith.constant 0 : index
    %c0_13 = arith.constant 0 : index
    %23 = vector.load %arg3[%c2, %c0_12, %c0_13] : memref<4x32x32xf32, #tpu.memory_space<vmem>>, vector<1x32x32xf32>
    %24 = vector.shape_cast %23 : vector<1x32x32xf32> to vector<32x32xf32>
    %c3 = arith.constant 3 : index
    %c0_14 = arith.constant 0 : index
    %c0_15 = arith.constant 0 : index
    %25 = vector.load %arg3[%c3, %c0_14, %c0_15] : memref<4x32x32xf32, #tpu.memory_space<vmem>>, vector<1x32x32xf32>
    %26 = vector.shape_cast %25 : vector<1x32x32xf32> to vector<32x32xf32>
    %27 = vector.extract_strided_slice %9 {offsets = [0, 0], sizes = [8, 1], strides = [1, 1]} : vector<8x4xf32> to vector<8x1xf32>
    %28 = vector.extract_strided_slice %9 {offsets = [0, 1], sizes = [8, 1], strides = [1, 1]} : vector<8x4xf32> to vector<8x1xf32>
    %29 = vector.extract_strided_slice %9 {offsets = [0, 2], sizes = [8, 1], strides = [1, 1]} : vector<8x4xf32> to vector<8x1xf32>
    %30 = vector.extract_strided_slice %9 {offsets = [0, 3], sizes = [8, 1], strides = [1, 1]} : vector<8x4xf32> to vector<8x1xf32>
    %31 = vector.extract_strided_slice %12 {offsets = [0, 0], sizes = [8, 1], strides = [1, 1]} : vector<8x4xf32> to vector<8x1xf32>
    %32 = vector.extract_strided_slice %12 {offsets = [0, 1], sizes = [8, 1], strides = [1, 1]} : vector<8x4xf32> to vector<8x1xf32>
    %33 = vector.extract_strided_slice %12 {offsets = [0, 2], sizes = [8, 1], strides = [1, 1]} : vector<8x4xf32> to vector<8x1xf32>
    %34 = vector.extract_strided_slice %12 {offsets = [0, 3], sizes = [8, 1], strides = [1, 1]} : vector<8x4xf32> to vector<8x1xf32>
    %35 = vector.broadcast %27 : vector<8x1xf32> to vector<8x32xf32>
    %36 = arith.mulf %35, %18 : vector<8x32xf32>
    %cst_16 = arith.constant dense<0.000000e+00> : vector<8x32xf32>
    %37 = tpu.matmul %18, %20, %cst_16 {dimension_numbers = #tpu.dot_dimension_numbers<[1], [0], [0], [1], [0, 0, 1, 1], [], []>} : vector<8x32xf32>, vector<32x32xf32>, vector<8x32xf32> -> vector<8x32xf32>
    %38 = vector.broadcast %31 : vector<8x1xf32> to vector<8x32xf32>
    %39 = arith.mulf %38, %37 : vector<8x32xf32>
    %40 = arith.addf %36, %39 : vector<8x32xf32>
    %41 = vector.broadcast %28 : vector<8x1xf32> to vector<8x32xf32>
    %42 = arith.mulf %41, %40 : vector<8x32xf32>
    %cst_17 = arith.constant dense<0.000000e+00> : vector<8x32xf32>
    %43 = tpu.matmul %40, %22, %cst_17 {dimension_numbers = #tpu.dot_dimension_numbers<[1], [0], [0], [1], [0, 0, 1, 1], [], []>} : vector<8x32xf32>, vector<32x32xf32>, vector<8x32xf32> -> vector<8x32xf32>
    %44 = vector.broadcast %32 : vector<8x1xf32> to vector<8x32xf32>
    %45 = arith.mulf %44, %43 : vector<8x32xf32>
    %46 = arith.addf %42, %45 : vector<8x32xf32>
    %47 = vector.broadcast %29 : vector<8x1xf32> to vector<8x32xf32>
    %48 = arith.mulf %47, %46 : vector<8x32xf32>
    %cst_18 = arith.constant dense<0.000000e+00> : vector<8x32xf32>
    %49 = tpu.matmul %46, %24, %cst_18 {dimension_numbers = #tpu.dot_dimension_numbers<[1], [0], [0], [1], [0, 0, 1, 1], [], []>} : vector<8x32xf32>, vector<32x32xf32>, vector<8x32xf32> -> vector<8x32xf32>
    %50 = vector.broadcast %33 : vector<8x1xf32> to vector<8x32xf32>
    %51 = arith.mulf %50, %49 : vector<8x32xf32>
    %52 = arith.addf %48, %51 : vector<8x32xf32>
    %53 = vector.broadcast %30 : vector<8x1xf32> to vector<8x32xf32>
    %54 = arith.mulf %53, %52 : vector<8x32xf32>
    %cst_19 = arith.constant dense<0.000000e+00> : vector<8x32xf32>
    %55 = tpu.matmul %52, %26, %cst_19 {dimension_numbers = #tpu.dot_dimension_numbers<[1], [0], [0], [1], [0, 0, 1, 1], [], []>} : vector<8x32xf32>, vector<32x32xf32>, vector<8x32xf32> -> vector<8x32xf32>
    %56 = vector.broadcast %34 : vector<8x1xf32> to vector<8x32xf32>
    %57 = arith.mulf %56, %55 : vector<8x32xf32>
    %58 = arith.addf %54, %57 : vector<8x32xf32>
    %c0_20 = arith.constant 0 : index
    %c0_21 = arith.constant 0 : index
    %c0_22 = arith.constant 0 : index
    %59 = vector.load %arg4[%c0_20, %c0_21, %c0_22] : memref<4x32x32xf32, #tpu.memory_space<vmem>>, vector<1x32x32xf32>
    %60 = vector.shape_cast %59 : vector<1x32x32xf32> to vector<32x32xf32>
    %cst_23 = arith.constant dense<0.000000e+00> : vector<8x32xf32>
    %61 = tpu.matmul %58, %60, %cst_23 {dimension_numbers = #tpu.dot_dimension_numbers<[1], [0], [0], [1], [0, 0, 1, 1], [], []>} : vector<8x32xf32>, vector<32x32xf32>, vector<8x32xf32> -> vector<8x32xf32>
    %62 = vector.broadcast %27 : vector<8x1xf32> to vector<8x32xf32>
    %63 = arith.mulf %62, %61 : vector<8x32xf32>
    %cst_24 = arith.constant dense<0.000000e+00> : vector<8x32xf32>
    %64 = tpu.matmul %61, %20, %cst_24 {dimension_numbers = #tpu.dot_dimension_numbers<[1], [0], [0], [1], [0, 0, 1, 1], [], []>} : vector<8x32xf32>, vector<32x32xf32>, vector<8x32xf32> -> vector<8x32xf32>
    %65 = vector.broadcast %31 : vector<8x1xf32> to vector<8x32xf32>
    %66 = arith.mulf %65, %64 : vector<8x32xf32>
    %67 = arith.addf %63, %66 : vector<8x32xf32>
    %68 = vector.broadcast %28 : vector<8x1xf32> to vector<8x32xf32>
    %69 = arith.mulf %68, %67 : vector<8x32xf32>
    %cst_25 = arith.constant dense<0.000000e+00> : vector<8x32xf32>
    %70 = tpu.matmul %67, %22, %cst_25 {dimension_numbers = #tpu.dot_dimension_numbers<[1], [0], [0], [1], [0, 0, 1, 1], [], []>} : vector<8x32xf32>, vector<32x32xf32>, vector<8x32xf32> -> vector<8x32xf32>
    %71 = vector.broadcast %32 : vector<8x1xf32> to vector<8x32xf32>
    %72 = arith.mulf %71, %70 : vector<8x32xf32>
    %73 = arith.addf %69, %72 : vector<8x32xf32>
    %74 = vector.broadcast %29 : vector<8x1xf32> to vector<8x32xf32>
    %75 = arith.mulf %74, %73 : vector<8x32xf32>
    %cst_26 = arith.constant dense<0.000000e+00> : vector<8x32xf32>
    %76 = tpu.matmul %73, %24, %cst_26 {dimension_numbers = #tpu.dot_dimension_numbers<[1], [0], [0], [1], [0, 0, 1, 1], [], []>} : vector<8x32xf32>, vector<32x32xf32>, vector<8x32xf32> -> vector<8x32xf32>
    %77 = vector.broadcast %33 : vector<8x1xf32> to vector<8x32xf32>
    %78 = arith.mulf %77, %76 : vector<8x32xf32>
    %79 = arith.addf %75, %78 : vector<8x32xf32>
    %80 = vector.broadcast %30 : vector<8x1xf32> to vector<8x32xf32>
    %81 = arith.mulf %80, %79 : vector<8x32xf32>
    %cst_27 = arith.constant dense<0.000000e+00> : vector<8x32xf32>
    %82 = tpu.matmul %79, %26, %cst_27 {dimension_numbers = #tpu.dot_dimension_numbers<[1], [0], [0], [1], [0, 0, 1, 1], [], []>} : vector<8x32xf32>, vector<32x32xf32>, vector<8x32xf32> -> vector<8x32xf32>
    %83 = vector.broadcast %34 : vector<8x1xf32> to vector<8x32xf32>
    %84 = arith.mulf %83, %82 : vector<8x32xf32>
    %85 = arith.addf %81, %84 : vector<8x32xf32>
    %c1_28 = arith.constant 1 : index
    %c0_29 = arith.constant 0 : index
    %c0_30 = arith.constant 0 : index
    %86 = vector.load %arg4[%c1_28, %c0_29, %c0_30] : memref<4x32x32xf32, #tpu.memory_space<vmem>>, vector<1x32x32xf32>
    %87 = vector.shape_cast %86 : vector<1x32x32xf32> to vector<32x32xf32>
    %cst_31 = arith.constant dense<0.000000e+00> : vector<8x32xf32>
    %88 = tpu.matmul %85, %87, %cst_31 {dimension_numbers = #tpu.dot_dimension_numbers<[1], [0], [0], [1], [0, 0, 1, 1], [], []>} : vector<8x32xf32>, vector<32x32xf32>, vector<8x32xf32> -> vector<8x32xf32>
    %89 = vector.broadcast %27 : vector<8x1xf32> to vector<8x32xf32>
    %90 = arith.mulf %89, %88 : vector<8x32xf32>
    %cst_32 = arith.constant dense<0.000000e+00> : vector<8x32xf32>
    %91 = tpu.matmul %88, %20, %cst_32 {dimension_numbers = #tpu.dot_dimension_numbers<[1], [0], [0], [1], [0, 0, 1, 1], [], []>} : vector<8x32xf32>, vector<32x32xf32>, vector<8x32xf32> -> vector<8x32xf32>
    %92 = vector.broadcast %31 : vector<8x1xf32> to vector<8x32xf32>
    %93 = arith.mulf %92, %91 : vector<8x32xf32>
    %94 = arith.addf %90, %93 : vector<8x32xf32>
    %95 = vector.broadcast %28 : vector<8x1xf32> to vector<8x32xf32>
    %96 = arith.mulf %95, %94 : vector<8x32xf32>
    %cst_33 = arith.constant dense<0.000000e+00> : vector<8x32xf32>
    %97 = tpu.matmul %94, %22, %cst_33 {dimension_numbers = #tpu.dot_dimension_numbers<[1], [0], [0], [1], [0, 0, 1, 1], [], []>} : vector<8x32xf32>, vector<32x32xf32>, vector<8x32xf32> -> vector<8x32xf32>
    %98 = vector.broadcast %32 : vector<8x1xf32> to vector<8x32xf32>
    %99 = arith.mulf %98, %97 : vector<8x32xf32>
    %100 = arith.addf %96, %99 : vector<8x32xf32>
    %101 = vector.broadcast %29 : vector<8x1xf32> to vector<8x32xf32>
    %102 = arith.mulf %101, %100 : vector<8x32xf32>
    %cst_34 = arith.constant dense<0.000000e+00> : vector<8x32xf32>
    %103 = tpu.matmul %100, %24, %cst_34 {dimension_numbers = #tpu.dot_dimension_numbers<[1], [0], [0], [1], [0, 0, 1, 1], [], []>} : vector<8x32xf32>, vector<32x32xf32>, vector<8x32xf32> -> vector<8x32xf32>
    %104 = vector.broadcast %33 : vector<8x1xf32> to vector<8x32xf32>
    %105 = arith.mulf %104, %103 : vector<8x32xf32>
    %106 = arith.addf %102, %105 : vector<8x32xf32>
    %107 = vector.broadcast %30 : vector<8x1xf32> to vector<8x32xf32>
    %108 = arith.mulf %107, %106 : vector<8x32xf32>
    %cst_35 = arith.constant dense<0.000000e+00> : vector<8x32xf32>
    %109 = tpu.matmul %106, %26, %cst_35 {dimension_numbers = #tpu.dot_dimension_numbers<[1], [0], [0], [1], [0, 0, 1, 1], [], []>} : vector<8x32xf32>, vector<32x32xf32>, vector<8x32xf32> -> vector<8x32xf32>
    %110 = vector.broadcast %34 : vector<8x1xf32> to vector<8x32xf32>
    %111 = arith.mulf %110, %109 : vector<8x32xf32>
    %112 = arith.addf %108, %111 : vector<8x32xf32>
    %c2_36 = arith.constant 2 : index
    %c0_37 = arith.constant 0 : index
    %c0_38 = arith.constant 0 : index
    %113 = vector.load %arg4[%c2_36, %c0_37, %c0_38] : memref<4x32x32xf32, #tpu.memory_space<vmem>>, vector<1x32x32xf32>
    %114 = vector.shape_cast %113 : vector<1x32x32xf32> to vector<32x32xf32>
    %cst_39 = arith.constant dense<0.000000e+00> : vector<8x32xf32>
    %115 = tpu.matmul %112, %114, %cst_39 {dimension_numbers = #tpu.dot_dimension_numbers<[1], [0], [0], [1], [0, 0, 1, 1], [], []>} : vector<8x32xf32>, vector<32x32xf32>, vector<8x32xf32> -> vector<8x32xf32>
    %116 = vector.broadcast %27 : vector<8x1xf32> to vector<8x32xf32>
    %117 = arith.mulf %116, %115 : vector<8x32xf32>
    %cst_40 = arith.constant dense<0.000000e+00> : vector<8x32xf32>
    %118 = tpu.matmul %115, %20, %cst_40 {dimension_numbers = #tpu.dot_dimension_numbers<[1], [0], [0], [1], [0, 0, 1, 1], [], []>} : vector<8x32xf32>, vector<32x32xf32>, vector<8x32xf32> -> vector<8x32xf32>
    %119 = vector.broadcast %31 : vector<8x1xf32> to vector<8x32xf32>
    %120 = arith.mulf %119, %118 : vector<8x32xf32>
    %121 = arith.addf %117, %120 : vector<8x32xf32>
    %122 = vector.broadcast %28 : vector<8x1xf32> to vector<8x32xf32>
    %123 = arith.mulf %122, %121 : vector<8x32xf32>
    %cst_41 = arith.constant dense<0.000000e+00> : vector<8x32xf32>
    %124 = tpu.matmul %121, %22, %cst_41 {dimension_numbers = #tpu.dot_dimension_numbers<[1], [0], [0], [1], [0, 0, 1, 1], [], []>} : vector<8x32xf32>, vector<32x32xf32>, vector<8x32xf32> -> vector<8x32xf32>
    %125 = vector.broadcast %32 : vector<8x1xf32> to vector<8x32xf32>
    %126 = arith.mulf %125, %124 : vector<8x32xf32>
    %127 = arith.addf %123, %126 : vector<8x32xf32>
    %128 = vector.broadcast %29 : vector<8x1xf32> to vector<8x32xf32>
    %129 = arith.mulf %128, %127 : vector<8x32xf32>
    %cst_42 = arith.constant dense<0.000000e+00> : vector<8x32xf32>
    %130 = tpu.matmul %127, %24, %cst_42 {dimension_numbers = #tpu.dot_dimension_numbers<[1], [0], [0], [1], [0, 0, 1, 1], [], []>} : vector<8x32xf32>, vector<32x32xf32>, vector<8x32xf32> -> vector<8x32xf32>
    %131 = vector.broadcast %33 : vector<8x1xf32> to vector<8x32xf32>
    %132 = arith.mulf %131, %130 : vector<8x32xf32>
    %133 = arith.addf %129, %132 : vector<8x32xf32>
    %134 = vector.broadcast %30 : vector<8x1xf32> to vector<8x32xf32>
    %135 = arith.mulf %134, %133 : vector<8x32xf32>
    %cst_43 = arith.constant dense<0.000000e+00> : vector<8x32xf32>
    %136 = tpu.matmul %133, %26, %cst_43 {dimension_numbers = #tpu.dot_dimension_numbers<[1], [0], [0], [1], [0, 0, 1, 1], [], []>} : vector<8x32xf32>, vector<32x32xf32>, vector<8x32xf32> -> vector<8x32xf32>
    %137 = vector.broadcast %34 : vector<8x1xf32> to vector<8x32xf32>
    %138 = arith.mulf %137, %136 : vector<8x32xf32>
    %139 = arith.addf %135, %138 : vector<8x32xf32>
    %c3_44 = arith.constant 3 : index
    %c0_45 = arith.constant 0 : index
    %c0_46 = arith.constant 0 : index
    %140 = vector.load %arg4[%c3_44, %c0_45, %c0_46] : memref<4x32x32xf32, #tpu.memory_space<vmem>>, vector<1x32x32xf32>
    %141 = vector.shape_cast %140 : vector<1x32x32xf32> to vector<32x32xf32>
    %cst_47 = arith.constant dense<0.000000e+00> : vector<8x32xf32>
    %142 = tpu.matmul %139, %141, %cst_47 {dimension_numbers = #tpu.dot_dimension_numbers<[1], [0], [0], [1], [0, 0, 1, 1], [], []>} : vector<8x32xf32>, vector<32x32xf32>, vector<8x32xf32> -> vector<8x32xf32>
    %143 = arith.mulf %142, %142 : vector<8x32xf32>
    %c0_48 = arith.constant 0 : index
    %c0_49 = arith.constant 0 : index
    %144 = vector.load %arg5[%c0_48, %c0_49] : memref<32x4xf32, #tpu.memory_space<vmem>>, vector<32x4xf32>
    %cst_50 = arith.constant dense<0.000000e+00> : vector<8x4xf32>
    %145 = tpu.matmul %143, %144, %cst_50 {dimension_numbers = #tpu.dot_dimension_numbers<[1], [0], [0], [1], [0, 0, 1, 1], [], []>} : vector<8x32xf32>, vector<32x4xf32>, vector<8x4xf32> -> vector<8x4xf32>
    %cst_51 = arith.constant 0.000000e+00 : f32
    %146 = vector.broadcast %cst_51 : f32 to vector<8x4xf32>
    %147 = arith.maximumf %145, %146 : vector<8x4xf32>
    %c0_52 = arith.constant 0 : index
    %c0_53 = arith.constant 0 : index
    %148 = vector.load %arg6[%c0_52, %c0_53] : memref<4x2xf32, #tpu.memory_space<vmem>>, vector<4x2xf32>
    %cst_54 = arith.constant dense<0.000000e+00> : vector<8x2xf32>
    %149 = tpu.matmul %147, %148, %cst_54 {dimension_numbers = #tpu.dot_dimension_numbers<[1], [0], [0], [1], [0, 0, 1, 1], [], []>} : vector<8x4xf32>, vector<4x2xf32>, vector<8x2xf32> -> vector<8x2xf32>
    %c0_55 = arith.constant 0 : index
    %c0_56 = arith.constant 0 : index
    %150 = vector.load %arg7[%c0_55, %c0_56] : memref<1x2xf32, #tpu.memory_space<vmem>>, vector<1x2xf32>
    %151 = vector.broadcast %150 : vector<1x2xf32> to vector<8x2xf32>
    %152 = arith.addf %149, %151 : vector<8x2xf32>
    %c0_57 = arith.constant 0 : index
    %c0_58 = arith.constant 0 : index
    %153 = vector.load %arg8[%c0_57, %c0_58] : memref<8x2xf32, #tpu.memory_space<vmem>>, vector<8x2xf32>
    tpu.vector_store %arg8[%c0_57, %c0_58], %152 {strides = array<i32>} : memref<8x2xf32, #tpu.memory_space<vmem>>, vector<8x2xf32>,
    return
  }
  func.func @transform_0(%arg0: i32) -> (i32, i32) {
    %c0_i32 = arith.constant 0 : i32
    %c0_i32_0 = arith.constant 0 : i32
    return %arg0, %c0_i32 : i32, i32
  }
  func.func @transform_1(%arg0: i32) -> (i32, i32) {
    %c0_i32 = arith.constant 0 : i32
    %c0_i32_0 = arith.constant 0 : i32
    %c0_i32_1 = arith.constant 0 : i32
    return %c0_i32, %c0_i32_0 : i32, i32
  }
  func.func @transform_2(%arg0: i32) -> (i32, i32, i32) {
    %c0_i32 = arith.constant 0 : i32
    %c0_i32_0 = arith.constant 0 : i32
    %c0_i32_1 = arith.constant 0 : i32
    %c0_i32_2 = arith.constant 0 : i32
    return %c0_i32, %c0_i32_0, %c0_i32_1 : i32, i32, i32
  }
  func.func @transform_3(%arg0: i32) -> (i32, i32, i32) {
    %c0_i32 = arith.constant 0 : i32
    %c0_i32_0 = arith.constant 0 : i32
    %c0_i32_1 = arith.constant 0 : i32
    %c0_i32_2 = arith.constant 0 : i32
    return %c0_i32, %c0_i32_0, %c0_i32_1 : i32, i32, i32
  }
  func.func @transform_4(%arg0: i32) -> (i32, i32) {
    %c0_i32 = arith.constant 0 : i32
    %c0_i32_0 = arith.constant 0 : i32
    %c0_i32_1 = arith.constant 0 : i32
    return %c0_i32, %c0_i32_0 : i32, i32
  }
  func.func @transform_5(%arg0: i32) -> (i32, i32) {
    %c0_i32 = arith.constant 0 : i32
    %c0_i32_0 = arith.constant 0 : i32
    %c0_i32_1 = arith.constant 0 : i32
    return %c0_i32, %c0_i32_0 : i32, i32
  }
  func.func @transform_6(%arg0: i32) -> (i32, i32) {
    %c0_i32 = arith.constant 0 : i32
    %c0_i32_0 = arith.constant 0 : i32
    %c0_i32_1 = arith.constant 0 : i32
    return %c0_i32, %c0_i32_0 : i32, i32
  }
  func.func @transform_7(%arg0: i32) -> (i32, i32) {
    %c0_i32 = arith.constant 0 : i32
    %c0_i32_0 = arith.constant 0 : i32
    return %arg0, %c0_i32 : i32, i32
  }
}

</mosaic_0001>

<bundles_post_ra>
// kernel: tpu_custom_call.1
= control target key start
LH: loop header
LB: loop body
LE: loop exit
PB: predicated region body
PF: predicated region fallthrough
CT: control target
= control target key end

     0   :  { %12 = vsyncpa [#allocation3], 0  ;;  %s2952_s0 = inlined_call_operand.vmem [shape: f32[8,4], index: 0, kind: input, shape index: {}]   ;;  %s2953_s1 = inlined_call_operand.vmem [shape: f32[1,4], index: 1, kind: input, shape index: {}]   ;;  %s2954_s2 = inlined_call_operand.hbm [shape: f32[4,32,32], index: 2, kind: input, shape index: {}]   ;;  %s2955_s3 = inlined_call_operand.hbm [shape: f32[4,32,32], index: 3, kind: input, shape index: {}]   ;;  %s2956_s4 = inlined_call_operand.vmem [shape: f32[32,4], index: 4, kind: input, shape index: {}]   ;;  %s2957_s5 = inlined_call_operand.vmem [shape: f32[4,2], index: 5, kind: input, shape index: {}]   ;;  %s2958_s6 = inlined_call_operand.vmem [shape: f32[1,2], index: 6, kind: input, shape index: {}]   ;;  %s2959_s7 = inlined_call_operand.vmem [shape: f32[8,2], index: 7, kind: output, shape index: {}]  }
   0x1   :  { %13 = vsyncpa [#allocation5], 0  ;;  %s2614_s24 = smov [#allocation2]   ;;  %s2566_s28 = scalar_lea.hbm %s2954_s2, 2048 }
   0x2   :  { %s23_s25 = sshll.u32 %s2614_s24, 4  ;;  %p2567_p0 = scmp.ne.s32.totalorder %s2954_s2, %s2566_s28  ;;  %s24_s25 = int_to_ptr.vmem [resolvable:$true] %s23_s25 }
   0x3   :  { %p2570_p1 = scmp.lt.u32.totalorder %s2566_s28, %s2954_s2 }
   0x5   :  { %p2572_p2 = pnand %p2570_p1, %p2567_p0 }
   0x7   :  { %2575 = shalt.err (!%p2572_p2)
}
   0x8   :  { %s2576_s10 = scalar_lea.vmem %s24_s25, 2048  ;;  %p2581_p4 = scmp.lt.s32.totalorder %s24_s25, %s24_s25 }
   0x9   :  { %p2577_p3 = scmp.ne.s32.totalorder %s24_s25, %s2576_s10  ;;  %p2582_p5 = scmp.lt.s32.totalorder %s2576_s10, %s2576_s10 }
   0xb   :  { %p2583_p6 = por %p2582_p5, %p2581_p4 }
   0xd   :  { %p2584_p7 = pnand %p2583_p6, %p2577_p3 }
   0xf   :  { %2587 = shalt.err (!%p2584_p7)
}
  0x10   :  { %s2615_s11 = smov 128   ;;  %s2616_s12 = smov 8  }
  0x11   :  { %29 = dma.hbm_to_vmem [thread:$0]  %s2954_s2, 2048, %s24_s25, [#allocation3], %s2615_s11, %s2615_s11, %s2616_s12  }
  0x12   :  { %s2617_s15 = smov [#allocation4]   ;;  %s2588_s19 = scalar_lea.hbm %s2955_s3, 2048 }
  0x13   :  { %s35_s16 = sshll.u32 %s2617_s15, 4  ;;  %p2589_p8 = scmp.ne.s32.totalorder %s2955_s3, %s2588_s19  ;;  %s36_s16 = int_to_ptr.vmem [resolvable:$true] %s35_s16 }
  0x14   :  { %p2592_p9 = scmp.lt.u32.totalorder %s2588_s19, %s2955_s3 }
  0x16   :  { %p2594_p10 = pnand %p2592_p9, %p2589_p8 }
  0x18   :  { %2597 = shalt.err (!%p2594_p10)
}
  0x19   :  { %s2598_s24 = scalar_lea.vmem %s36_s16, 2048  ;;  %p2603_p12 = scmp.lt.s32.totalorder %s36_s16, %s36_s16 }
  0x1a   :  { %p2599_p11 = scmp.ne.s32.totalorder %s36_s16, %s2598_s24  ;;  %p2604_p13 = scmp.lt.s32.totalorder %s2598_s24, %s2598_s24 }
  0x1c   :  { %p2605_p0 = por %p2604_p13, %p2603_p12 }
  0x1e   :  { %p2606_p1 = pnand %p2605_p0, %p2599_p11 }
  0x20   :  { %2609 = shalt.err (!%p2606_p1)
}
  0x21   :  { %41 = dma.hbm_to_vmem [thread:$0]  %s2955_s3, 2048, %s36_s16, [#allocation5], %s2615_s11, %s2615_s11, %s2616_s12  }
  0x22   :  { %2610 = dma.done.wait [#allocation3], 2048  }
  0x23   :  { %2611 = vsyncadd [#allocation3], 4294965248 }
  0x24   :  { %2612 = dma.done.wait [#allocation5], 2048  }
  0x25   :  { %2613 = vsyncadd [#allocation5], 4294965248  ;;  %v2618_v0 = vmov 0.0|0.0   ;;  %vm2619_vm0 = vmmov 0   ;;  %v2620_v1 = vmov 0.0   ;;  %v2621_v2 = vmov 0  }
  0x26   :  { %2407 = vmatprep.subr.bf16.mxu0 %v2618_v0  ;;  %2179 = vmatprep.mubr.msk.f32.mxu0 %vm2619_vm0, %v2620_v1  ;;  %v273_v3 = vlaneseq  ;;  %v2622_v4 = vmov 1   ;;  %v277_v5 = vld [vmem:[#allocation2] sm:$0xff]  ;;  %v278_v6 = vld [vmem:[#allocation2 + $0x8] sm:$0xff]  ;;  %v279_v7 = vld [vmem:[#allocation2 + $0x10] sm:$0xff]  ;;  %vm302_vm2 = vcmask 261120  }
  0x27   :  { %2554 = vset.pattern.permute.xlu0 %v2621_v2  ;;  %2413 = vmatprep.subr.bf16.mxu1 %v2618_v0  ;;  %v2701_v9 = vpack.c.bf16 %v278_v6, %v277_v5  ;;  %v280_v10 = vld [vmem:[#allocation2 + $0x18] sm:$0xff]  ;;  %v2031_v11 = vld [vmem:[%s2953_s1] ss:$0 sm:$0xff]  ;;  %v2623_v30 = vmov 683565275  }
  0x28   :  { %2555 = vset.pattern.permute.xlu1 %v2622_v4  ;;  %2190 = vmatprep.mubr.msk.f32.mxu1 %vm2619_vm0, %v2620_v1  ;;  %v274_v8 = vand.u32 127, %v273_v3  ;;  %v55_v12 = vld [vmem:[%s2952_s0] sm:$0xff]  ;;  %v2710_v14 = vpack.c.bf16 %v280_v10, %v279_v7  ;;  %v2624_v32 = vmov 2475754826   ;;  %v2625_v34 = vmov 2131351028  }
  0x29   :  { %v62_v13 = vmul.f32 %v2031_v11, %v55_v12  ;;  %2409 = vmatpush3.bf16.msra.mxu0 %v2701_v9  ;;  %v2626_v36 = vmov 2102212464   ;;  %v2627_v38 = vmov 920167782   ;;  %v2628_v45 = vmov 1326507024  }
  0x2a   :  { %2410 = vmatprep.subr.bf16.mxu0 %v2618_v0  ;;  %vm275_vm1 = vcmp.eq.s32.totalorder %v274_v8, 0 }
  0x2b   :  { %2560 = vtanh.f32 %v62_v13  ;;  %v2715_v15 = vsel %vm275_vm1, 1.0, %v2620_v1 }
  0x2d   :  { %2412 = vmatpush3.bf16.msra.mxu0 %v2710_v14 }
  0x2e   :  { %2419 = vmatprep.subr.bf16.mxu0 %v2618_v0 }
  0x30   :  { %2180 = vmatmul.mubr.msk.f32.vlgmr.msra.gmra.mrb[0].mxu0 %vm302_vm2, %v2715_v15 }
  0x31   :  { %2201 = vmatprep.mubr.msk.f32.mxu0 %vm2619_vm0, %v2620_v1 }
  0x35   :  { %v2561_v16 = vpop.eup %2560 }
  0x36   :  { %v64_v17 = vmul.f32 3.1415927, %v2561_v16 }
  0x38   :  { %v2722_v18 = vmul.f32 0.5, %v64_v17 }
  0x3a   :  { %v69_v19 = vand.u32 2139095040, %v2722_v18  ;;  %v66_v21 = vand.u32 2147483647, %v2722_v18  ;;  %vm68_vm10 = vcmp.lt.s32.totalorder %v2722_v18, 0 }
  0x3c   :  { %v70_v20 = vshrl.u32 %v69_v19, 23  ;;  %v73_v24 = vand.u32 8388607, %v66_v21  ;;  %vm67_vm11 = vcmp.le.f32.partialorder %v66_v21, 0.7853982 }
  0x3e   :  { %v2032_v22 = vadd.s32 4294967169, %v70_v20  ;;  %v74_v27 = vor.u32 8388608, %v73_v24 }
  0x40   :  { %v76_v23 = vadd.s32 1, %v2032_v22  ;;  %v114_v47 = vshll.u32 %v74_v27, 8 }
  0x42   :  { %vm77_vm3 = vcmp.gt.s32.totalorder %v76_v23, 0 }
  0x43   :  { %v78_v25 = vsel %vm77_vm3, %v76_v23, 0 }
  0x44   :  { %v80_v26 = vand.u32 31, %v78_v25  ;;  %v79_v28 = vshrl.u32 %v78_v25, 5 }
  0x46   :  { %v81_v29 = vsub.s32 32, %v80_v26  ;;  %v83_v31 = vshll.u32 %v2623_v30, %v80_v26  ;;  %v86_v33 = vshll.u32 %v2624_v32, %v80_v26  ;;  %v89_v35 = vshll.u32 %v2625_v34, %v80_v26 }
  0x47   :  { %v92_v37 = vshll.u32 %v2626_v36, %v80_v26  ;;  %v95_v39 = vshll.u32 %v2627_v38, %v80_v26  ;;  %vm98_vm4 = vcmp.lt.s32.totalorder %v79_v28, 1  ;;  %vm101_vm5 = vcmp.lt.s32.totalorder %v79_v28, 4 }
  0x48   :  { %v82_v40 = vshrl.u32 %v2623_v30, %v81_v29  ;;  %v84_v41 = vshrl.u32 %v2624_v32, %v81_v29  ;;  %v87_v42 = vshrl.u32 %v2625_v34, %v81_v29  ;;  %v90_v43 = vshrl.u32 %v2626_v36, %v81_v29 }
  0x49   :  { %v93_v44 = vshrl.u32 %v2627_v38, %v81_v29  ;;  %v96_v46 = vshrl.u32 %v2628_v45, %v81_v29  ;;  %vm99_vm6 = vcmp.lt.s32.totalorder %v79_v28, 2  ;;  %vm100_vm7 = vcmp.lt.s32.totalorder %v79_v28, 3 }
  0x4a   :  { %v85_v48 = vor.u32 %v84_v41, %v83_v31  ;;  %v88_v49 = vor.u32 %v87_v42, %v86_v33  ;;  %v91_v50 = vor.u32 %v90_v43, %v89_v35 }
  0x4b   :  { %v94_v51 = vor.u32 %v93_v44, %v92_v37  ;;  %v97_v52 = vor.u32 %v96_v46, %v95_v39 }
  0x4c   :  { %v102_v53 = vsel %vm98_vm4, %v82_v40, %v85_v48  ;;  %v103_v54 = vsel %vm101_vm5, %v91_v50, 2102212464  ;;  %v106_v55 = vsel %vm98_vm4, %v85_v48, %v88_v49  ;;  %v110_v56 = vsel %vm98_vm4, %v88_v49, %v91_v50 }
  0x4d   :  { %v104_v57 = vsel %vm100_vm7, %v88_v49, %v103_v54  ;;  %v107_v58 = vsel %vm101_vm5, %v94_v51, 920167782  ;;  %v111_v59 = vsel %vm101_vm5, %v97_v52, 1326507024  ;;  %vm158_vm4 = vweird.f32 %v2722_v18 }
  0x4e   :  { %v108_v60 = vsel %vm100_vm7, %v91_v50, %v107_v58  ;;  %v112_v61 = vsel %vm100_vm7, %v94_v51, %v111_v59  ;;  %v105_v62 = vsel %vm99_vm6, %v102_v53, %v104_v57  ;;  %vm1949_vm5 = vcmask 1043456  }
  0x4f   :  { %v109_v63 = vsel %vm99_vm6, %v106_v55, %v108_v60  ;;  %v113_v2 = vsel %vm99_vm6, %v110_v56, %v112_v61  ;;  %v121_v7 = vmul.u32 %v114_v47, %v105_v62  ;;  %v282_v55 = vld [vmem:[#allocation2 + $0x20] sm:$0xff]  ;;  %v283_v56 = vld [vmem:[#allocation2 + $0x28] sm:$0xff]  ;;  %v284_v60 = vld [vmem:[#allocation2 + $0x30] sm:$0xff]  ;;  %vm2023_vm6 = vcmask 15360  }
  0x50   :  { %v2728_v3 = vmul.u32.u64.low %v114_v47, %v113_v2  ;;  %v2729_v4 = vmul.u32.u64.high %v114_v47, %v113_v2, %v2728_v3  ;;  %v2731_v5 = vmul.u32.u64.low %v114_v47, %v109_v63  ;;  %v2732_v6 = vmul.u32.u64.high %v114_v47, %v109_v63, %v2731_v5  ;;  %v287_v62 = vld [vmem:[#allocation2 + $0x40] sm:$0xff]  ;;  %v288_v63 = vld [vmem:[#allocation2 + $0x48] sm:$0xff] }
  0x51   :  { %v2743_v58 = vpack.c.bf16 %v283_v56, %v282_v55  ;;  %v2629_v2 = vmov 2   ;;  %v2751_v3 = vpack.c.bf16 %v288_v63, %v287_v62 }
  0x52   :  { %vm123_vm8 = vc.u32 %v2729_v4, %v2731_v5  ;;  %v124_v8 = vadd.s32 1, %v2732_v6  ;;  %v122_v24 = vadd.s32 %v2731_v5, %v2729_v4 }
  0x53   :  { %2415 = vmatpush3.bf16.msra.mxu1 %v2743_v58  ;;  %2421 = vmatpush3.bf16.msra.mxu0 %v2751_v3 }
  0x54   :  { %v125_v10 = vsel %vm123_vm8, %v124_v8, %v2732_v6  ;;  %2416 = vmatprep.subr.bf16.mxu1 %v2618_v0  ;;  %2422 = vmatprep.subr.bf16.mxu0 %v2618_v0 }
  0x55   :  { %v126_v11 = vadd.s32 %v125_v10, %v121_v7 }
  0x57   :  { %v127_v12 = vadd.s32 536870912, %v126_v11 }
  0x59   :  { %v128_v13 = vshrl.u32 %v127_v12, 30  ;;  %v289_v12 = vld [vmem:[#allocation2 + $0x50] sm:$0xff] }
  0x5b   :  { %v129_v16 = vshll.u32 %v128_v13, 30  ;;  %v152_v37 = vsub.s32 4, %v128_v13 }
  0x5d   :  { %v130_v17 = vsub.s32 %v126_v11, %v129_v16  ;;  %v153_v40 = vsel %vm68_vm10, %v152_v37, %v128_v13  ;;  %v290_v13 = vld [vmem:[#allocation2 + $0x58] sm:$0xff] }
  0x5e   :  { %v155_v42 = vsel %vm67_vm11, 0, %v153_v40  ;;  %v2765_v16 = vpack.c.bf16 %v290_v13, %v289_v12 }
  0x5f   :  { %v132_v19 = vsub.s32 0, %v130_v17  ;;  %v262_v43 = vadd.s32 3, %v155_v42  ;;  %v159_v44 = vand.u32 3, %v155_v42  ;;  %v637_v42 = vld [vmem:[#allocation4 + $0x10] sm:$0xff] }
  0x60   :  { %2424 = vmatpush3.bf16.msra.mxu0 %v2765_v16 }
  0x61   :  { %v2033_v20 = vmin.u32 %v132_v19, %v130_v17  ;;  %v263_v45 = vand.u32 3, %v262_v43  ;;  %vm164_vm12 = vcmp.eq.s32.totalorder %v159_v44, 2  ;;  %vm161_vm14 = vcmp.eq.s32.totalorder %v159_v44, 0  ;;  %2431 = vmatprep.subr.bf16.mxu0 %v2618_v0  ;;  %v293_v19 = vld [vmem:[#allocation2 + $0x68] sm:$0xff]  ;;  %v638_v43 = vld [vmem:[#allocation4 + $0x18] sm:$0xff] }
  0x62   :  { %vm160_vm1 = vcmp.lt.s32.totalorder %v159_v44, 2  ;;  %v2435_v44 = vpack.c.bf16 %v638_v43, %v637_v42 }
  0x63   :  { %v134_v22 = vclz %v2033_v20  ;;  %vm268_vm13 = vcmp.eq.s32.totalorder %v263_v45, 2  ;;  %vm265_vm15 = vcmp.eq.s32.totalorder %v263_v45, 0  ;;  %vm264_vm3 = vcmp.lt.s32.totalorder %v263_v45, 2 }
  0x64   :  { %v2630_v20 = vmov 3  }
  0x65   :  { %v2034_v23 = vadd.s32 4294967294, %v134_v22 }
  0x67   :  { %vm2035_vm9 = vcmp.lt.s32.totalorder %v2034_v23, 0 }
  0x68   :  { %v137_v25 = vsel %vm2035_vm9, 0, %v2034_v23 }
  0x69   :  { %v138_v26 = vsub.s32 32, %v137_v25  ;;  %v139_v27 = vshll.u32 %v130_v17, %v137_v25  ;;  %v142_v28 = vsub.s32 4294967266, %v137_v25  ;;  %v292_v17 = vld [vmem:[#allocation2 + $0x60] sm:$0xff] }
  0x6b   :  { %v140_v29 = vshrl.u32 %v122_v24, %v138_v26  ;;  %v143_v30 = vadd.s32 127, %v142_v28 }
  0x6d   :  { %v141_v31 = vor.u32 %v140_v29, %v139_v27  ;;  %v144_v32 = vshll.u32 %v143_v30, 23  ;;  %v294_v29 = vld [vmem:[#allocation2 + $0x70] sm:$0xff]  ;;  %v295_v30 = vld [vmem:[#allocation2 + $0x78] sm:$0xff] }
  0x6f   :  { %v145_v33 = vor.u32 4788187, %v144_v32  ;;  %v148_v34 = vcvt.s32.f32 %v141_v31  ;;  %v2782_v31 = vpack.c.bf16 %v295_v30, %v294_v29  ;;  %v635_v32 = vld [vmem:[#allocation4] sm:$0xff] }
  0x71   :  { %v146_v35 = vand.u32 2147483647, %v145_v33  ;;  %v636_v33 = vld [vmem:[#allocation4 + $0x8] sm:$0xff] }
  0x73   :  { %v149_v36 = vmul.f32 %v148_v34, %v146_v35  ;;  %v2432_v34 = vpack.c.bf16 %v636_v33, %v635_v32 }
  0x75   :  { %v150_v38 = vxor.u32 2147483648, %v149_v36 }
  0x77   :  { %v151_v39 = vsel %vm68_vm10, %v150_v38, %v149_v36 }
  0x78   :  { %v154_v41 = vsel %vm67_vm11, %v2722_v18, %v151_v39  ;;  %v285_v18 = vld [vmem:[#allocation2 + $0x38] sm:$0xff] }
  0x79   :  { %2562 = vcosq.f32 %v154_v41  ;;  %v2747_v61 = vpack.c.bf16 %v285_v18, %v284_v60 }
  0x7a   :  { %2564 = vsinq.f32 %v154_v41 }
  0x7b   :  { %2418 = vmatpush3.bf16.msra.mxu1 %v2747_v61 }
  0x7c   :  { %2425 = vmatprep.subr.bf16.mxu1 %v2618_v0 }
  0x83   :  { %v2563_v46 = vpop.eup %2562 }
  0x84   :  { %v2565_v47 = vpop.eup %2564  ;;  %v165_v48 = vxor.u32 2147483648, %v2563_v46 }
  0x85   :  { %v162_v21 = vxor.u32 2147483648, %v2565_v47 }
  0x86   :  { %v166_v49 = vsel %vm164_vm12, %v165_v48, %v2565_v47  ;;  %v270_v50 = vsel %vm268_vm13, %v165_v48, %v2565_v47 }
  0x87   :  { %v163_v51 = vsel %vm161_vm14, %v2563_v46, %v162_v21  ;;  %v267_v52 = vsel %vm265_vm15, %v2563_v46, %v162_v21 }
  0x88   :  { %v167_v53 = vsel %vm160_vm1, %v163_v51, %v166_v49  ;;  %v271_v54 = vsel %vm264_vm3, %v267_v52, %v270_v50 }
  0x89   :  { %v168_v57 = vsel %vm158_vm4, nan, %v167_v53  ;;  %v272_v59 = vsel %vm158_vm4, nan, %v271_v54 }
  0x8a   :  { %298 = vperm.xlu0 %2554, %v168_v57   ;;  %384 = vperm.xlu1 %2555, %v168_v57  }
  0x8e   :  { %378 = vperm.xlu0 %2554, %v272_v59   ;;  %462 = vperm.xlu1 %2555, %v272_v59  }
  0x92   :  { %2556 = vset.pattern.permute.xlu0 %v2629_v2  ;;  %2557 = vset.pattern.permute.xlu1 %v2629_v2  ;;  %v1017_v2 = vld [vmem:[#allocation4 + $0x20] sm:$0xff] }
  0x93   :  { %468 = vperm.xlu0 %2556, %v168_v57   ;;  %546 = vperm.xlu1 %2557, %v272_v59  }
  0x97   :  { %2558 = vset.pattern.permute.xlu1 %v2630_v20  ;;  %2559 = vset.pattern.permute.xlu0 %v2630_v20 }
  0x98   :  { %552 = vperm.xlu1 %2558, %v168_v57   ;;  %630 = vperm.xlu0 %2559, %v272_v59  }
 0x103   :  { %v372_v4 = vpop.f32.mrb[0].mxu0 }
 0x104   :  { %v2181_v5 = vpop.f32.mrb[1].mxu0 }
 0x109   :  { %v2755_v6 = vpop.permute.xlu0 %298  ;;  %v2773_v22 = vpop.permute.xlu1 %384 }
 0x10a   :  { %v301_v8 = vmul.f32 %v2755_v6, %v2715_v15  ;;  %v2769_v15 = vpack.c.bf16 %v293_v19, %v292_v17  ;;  %v1019_v17 = vld [vmem:[#allocation4 + $0x30] sm:$0xff]  ;;  %v1020_v19 = vld [vmem:[#allocation4 + $0x38] sm:$0xff] }
 0x10b   :  { %v2465_v20 = vpack.c.bf16 %v1020_v19, %v1019_v17  ;;  %v1859_v19 = vld [vmem:[%s2956_s4] sm:$0xff] }
 0x10d   :  { %v2757_v7 = vpop.permute.xlu0 %378  ;;  %v2775_v23 = vpop.permute.xlu1 %462 }
 0x10e   :  { %v381_v10 = vmul.f32 %v2757_v7, %v372_v4  ;;  %v1018_v4 = vld [vmem:[#allocation4 + $0x28] sm:$0xff] }
 0x10f   :  { %v2462_v5 = vpack.c.bf16 %v1018_v4, %v1017_v2 }
 0x110   :  { %v382_v11 = vadd.f32 %v381_v10, %v301_v8 }
 0x112   :  { %2191 = vmatmul.mubr.msk.f32.vlgmr.msra.gmra.mrb[0].mxu1 %vm302_vm2, %v382_v11  ;;  %v387_v25 = vmul.f32 %v2773_v22, %v382_v11  ;;  %v2787_v35 = vpop.permute.xlu0 %468  ;;  %v2789_v36 = vpop.permute.xlu1 %546 }
 0x113   :  { %2212 = vmatprep.mubr.msk.f32.mxu1 %vm2619_vm0, %v2620_v1  ;;  %2427 = vmatpush3.bf16.msra.mxu1 %v2769_v15 }
 0x114   :  { %2428 = vmatprep.subr.bf16.mxu1 %v2618_v0 }
 0x117   :  { %2430 = vmatpush3.bf16.msra.mxu1 %v2782_v31  ;;  %v2801_v45 = vpop.permute.xlu1 %552  ;;  %v2803_v46 = vpop.permute.xlu0 %630 }
 0x118   :  { %2437 = vmatprep.subr.bf16.mxu1 %v2618_v0 }
 0x1e5   :  { %v457_v24 = vpop.f32.mrb[0].mxu1 }
 0x1e6   :  { %v465_v26 = vmul.f32 %v2775_v23, %v457_v24  ;;  %v2192_v27 = vpop.f32.mrb[1].mxu1 }
 0x1e8   :  { %v466_v28 = vadd.f32 %v465_v26, %v387_v25 }
 0x1ea   :  { %2202 = vmatmul.mubr.msk.f32.vlgmr.msra.gmra.mrb[2].mxu0 %vm302_vm2, %v466_v28  ;;  %v471_v38 = vmul.f32 %v2787_v35, %v466_v28 }
 0x1eb   :  { %2223 = vmatprep.mubr.msk.f32.mxu0 %vm2619_vm0, %v2620_v1  ;;  %2433 = vmatpush3.bf16.msra.mxu0 %v2432_v34 }
 0x1ec   :  { %2434 = vmatprep.subr.bf16.mxu0 %v2618_v0 }
 0x1ef   :  { %2436 = vmatpush3.bf16.msra.mxu0 %v2435_v44  ;;  %v1399_v44 = vld [vmem:[#allocation4 + $0x40] sm:$0xff] }
 0x1f0   :  { %2443 = vmatprep.subr.bf16.mxu0 %v2618_v0 }
 0x2bd   :  { %v541_v37 = vpop.f32.mrb[2].mxu0 }
 0x2be   :  { %v549_v39 = vmul.f32 %v2789_v36, %v541_v37  ;;  %v2203_v40 = vpop.f32.mrb[3].mxu0 }
 0x2c0   :  { %v550_v41 = vadd.f32 %v549_v39, %v471_v38 }
 0x2c2   :  { %2213 = vmatmul.mubr.msk.f32.vlgmr.msra.gmra.mrb[2].mxu1 %vm302_vm2, %v550_v41  ;;  %v555_v48 = vmul.f32 %v2801_v45, %v550_v41 }
 0x2c3   :  { %2439 = vmatpush3.bf16.msra.mxu1 %v2701_v9  ;;  %2234 = vmatprep.mubr.msk.f32.mxu1 %vm2619_vm0, %v2620_v1 }
 0x2c4   :  { %2440 = vmatprep.subr.bf16.mxu1 %v2618_v0 }
 0x2c7   :  { %2442 = vmatpush3.bf16.msra.mxu1 %v2710_v14 }
 0x2c8   :  { %2449 = vmatprep.subr.bf16.mxu1 %v2618_v0 }
 0x395   :  { %v625_v47 = vpop.f32.mrb[2].mxu1 }
 0x396   :  { %v633_v21 = vmul.f32 %v2803_v46, %v625_v47  ;;  %v2214_v49 = vpop.f32.mrb[3].mxu1  ;;  %v1400_v47 = vld [vmem:[#allocation4 + $0x48] sm:$0xff] }
 0x398   :  { %v634_v50 = vadd.f32 %v633_v21, %v555_v48  ;;  %v2492_v48 = vpack.c.bf16 %v1400_v47, %v1399_v44 }
 0x39a   :  { %2224 = vmatmul.mubr.msk.f32.vlgmr.msra.gmra.mrb[4].mxu0 %vm302_vm2, %v634_v50 }
 0x39b   :  { %2445 = vmatpush3.bf16.msra.mxu0 %v2743_v58  ;;  %2245 = vmatprep.mubr.msk.f32.mxu0 %vm2619_vm0, %v2620_v1 }
 0x39c   :  { %2446 = vmatprep.subr.bf16.mxu0 %v2618_v0 }
 0x39f   :  { %2448 = vmatpush3.bf16.msra.mxu0 %v2747_v61 }
 0x3a0   :  { %2455 = vmatprep.subr.bf16.mxu0 %v2618_v0 }
 0x46d   :  { %v708_v51 = vpop.f32.mrb[4].mxu0 }
 0x46e   :  { %v2225_v52 = vpop.f32.mrb[5].mxu0  ;;  %2235 = vmatmul.mubr.msk.f32.vlgmr.msra.gmra.mrb[4].mxu1 %vm302_vm2, %v708_v51  ;;  %v712_v54 = vmul.f32 %v708_v51, %v2755_v6 }
 0x46f   :  { %2451 = vmatpush3.bf16.msra.mxu1 %v2751_v3  ;;  %2256 = vmatprep.mubr.msk.f32.mxu1 %vm2619_vm0, %v2620_v1 }
 0x470   :  { %2452 = vmatprep.subr.bf16.mxu1 %v2618_v0 }
 0x473   :  { %2454 = vmatpush3.bf16.msra.mxu1 %v2765_v16 }
 0x474   :  { %2461 = vmatprep.subr.bf16.mxu1 %v2618_v0 }
 0x541   :  { %v782_v53 = vpop.f32.mrb[4].mxu1 }
 0x542   :  { %v786_v55 = vmul.f32 %v782_v53, %v2757_v7  ;;  %v2236_v56 = vpop.f32.mrb[5].mxu1  ;;  %v1401_v53 = vld [vmem:[#allocation4 + $0x50] sm:$0xff] }
 0x544   :  { %v787_v57 = vadd.f32 %v786_v55, %v712_v54  ;;  %v1402_v54 = vld [vmem:[#allocation4 + $0x58] sm:$0xff] }
 0x545   :  { %v2495_v55 = vpack.c.bf16 %v1402_v54, %v1401_v53 }
 0x546   :  { %2246 = vmatmul.mubr.msk.f32.vlgmr.msra.gmra.mrb[6].mxu0 %vm302_vm2, %v787_v57  ;;  %v788_v60 = vmul.f32 %v787_v57, %v2773_v22 }
 0x547   :  { %2457 = vmatpush3.bf16.msra.mxu0 %v2769_v15  ;;  %2267 = vmatprep.mubr.msk.f32.mxu0 %vm2619_vm0, %v2620_v1 }
 0x548   :  { %2458 = vmatprep.subr.bf16.mxu0 %v2618_v0 }
 0x54b   :  { %2460 = vmatpush3.bf16.msra.mxu0 %v2782_v31 }
 0x54c   :  { %2467 = vmatprep.subr.bf16.mxu0 %v2618_v0 }
 0x619   :  { %v858_v59 = vpop.f32.mrb[6].mxu0 }
 0x61a   :  { %v862_v18 = vmul.f32 %v858_v59, %v2775_v23  ;;  %v2247_v62 = vpop.f32.mrb[7].mxu0 }
 0x61c   :  { %v863_v63 = vadd.f32 %v862_v18, %v788_v60 }
 0x61e   :  { %2257 = vmatmul.mubr.msk.f32.vlgmr.msra.gmra.mrb[6].mxu1 %vm302_vm2, %v863_v63  ;;  %v864_v10 = vmul.f32 %v863_v63, %v2787_v35 }
 0x61f   :  { %2278 = vmatprep.mubr.msk.f32.mxu1 %vm2619_vm0, %v2620_v1  ;;  %2463 = vmatpush3.bf16.msra.mxu1 %v2462_v5  ;;  %v1782_v5 = vld [vmem:[#allocation4 + $0x68] sm:$0xff] }
 0x620   :  { %2464 = vmatprep.subr.bf16.mxu1 %v2618_v0 }
 0x623   :  { %2466 = vmatpush3.bf16.msra.mxu1 %v2465_v20 }
 0x624   :  { %2473 = vmatprep.subr.bf16.mxu1 %v2618_v0 }
 0x6f1   :  { %v934_v8 = vpop.f32.mrb[6].mxu1 }
 0x6f2   :  { %v938_v11 = vmul.f32 %v934_v8, %v2789_v36  ;;  %v2258_v12 = vpop.f32.mrb[7].mxu1 }
 0x6f3   :  { %v1783_v12 = vld [vmem:[#allocation4 + $0x70] sm:$0xff] }
 0x6f4   :  { %v939_v13 = vadd.f32 %v938_v11, %v864_v10 }
 0x6f6   :  { %2268 = vmatmul.mubr.msk.f32.vlgmr.msra.gmra.mrb[8].mxu0 %vm302_vm2, %v939_v13  ;;  %v940_v25 = vmul.f32 %v939_v13, %v2801_v45  ;;  %v1784_v13 = vld [vmem:[#allocation4 + $0x78] sm:$0xff] }
 0x6f7   :  { %2469 = vmatpush3.bf16.msra.mxu0 %v2701_v9  ;;  %2289 = vmatprep.mubr.msk.f32.mxu0 %vm2619_vm0, %v2620_v1  ;;  %v2525_v17 = vpack.c.bf16 %v1784_v13, %v1783_v12 }
 0x6f8   :  { %2470 = vmatprep.subr.bf16.mxu0 %v2618_v0 }
 0x6fb   :  { %2472 = vmatpush3.bf16.msra.mxu0 %v2710_v14 }
 0x6fc   :  { %2479 = vmatprep.subr.bf16.mxu0 %v2618_v0 }
 0x7c9   :  { %v1010_v24 = vpop.f32.mrb[8].mxu0 }
 0x7ca   :  { %v1014_v26 = vmul.f32 %v1010_v24, %v2803_v46  ;;  %v2269_v27 = vpop.f32.mrb[9].mxu0 }
 0x7cc   :  { %v1015_v28 = vadd.f32 %v1014_v26, %v940_v25 }
 0x7ce   :  { %2279 = vmatmul.mubr.msk.f32.vlgmr.msra.gmra.mrb[8].mxu1 %vm302_vm2, %v1015_v28  ;;  %v1861_v28 = vld [vmem:[%s2956_s4 + $0x10] sm:$0xff] }
 0x7cf   :  { %2475 = vmatpush3.bf16.msra.mxu1 %v2743_v58  ;;  %2300 = vmatprep.mubr.msk.f32.mxu1 %vm2619_vm0, %v2620_v1 }
 0x7d0   :  { %2476 = vmatprep.subr.bf16.mxu1 %v2618_v0 }
 0x7d3   :  { %2478 = vmatpush3.bf16.msra.mxu1 %v2747_v61 }
 0x7d4   :  { %2485 = vmatprep.subr.bf16.mxu1 %v2618_v0 }
 0x8a1   :  { %v1090_v29 = vpop.f32.mrb[8].mxu1 }
 0x8a2   :  { %v2280_v30 = vpop.f32.mrb[9].mxu1  ;;  %2290 = vmatmul.mubr.msk.f32.vlgmr.msra.gmra.mrb[10].mxu0 %vm302_vm2, %v1090_v29  ;;  %v1094_v33 = vmul.f32 %v1090_v29, %v2755_v6 }
 0x8a3   :  { %2481 = vmatpush3.bf16.msra.mxu0 %v2751_v3  ;;  %2311 = vmatprep.mubr.msk.f32.mxu0 %vm2619_vm0, %v2620_v1 }
 0x8a4   :  { %2482 = vmatprep.subr.bf16.mxu0 %v2618_v0 }
 0x8a7   :  { %2484 = vmatpush3.bf16.msra.mxu0 %v2765_v16 }
 0x8a8   :  { %2491 = vmatprep.subr.bf16.mxu0 %v2618_v0 }
 0x975   :  { %v1164_v32 = vpop.f32.mrb[10].mxu0 }
 0x976   :  { %v1168_v34 = vmul.f32 %v1164_v32, %v2757_v7  ;;  %v2291_v37 = vpop.f32.mrb[11].mxu0 }
 0x977   :  { %v2061_v37 = vld [vmem:[%s2958_s6] ss:$0 sm:$0xff] }
 0x978   :  { %v1169_v38 = vadd.f32 %v1168_v34, %v1094_v33 }
 0x97a   :  { %2301 = vmatmul.mubr.msk.f32.vlgmr.msra.gmra.mrb[10].mxu1 %vm302_vm2, %v1169_v38  ;;  %v1170_v40 = vmul.f32 %v1169_v38, %v2773_v22 }
 0x97b   :  { %2487 = vmatpush3.bf16.msra.mxu1 %v2769_v15  ;;  %2322 = vmatprep.mubr.msk.f32.mxu1 %vm2619_vm0, %v2620_v1 }
 0x97c   :  { %2488 = vmatprep.subr.bf16.mxu1 %v2618_v0 }
 0x97f   :  { %2490 = vmatpush3.bf16.msra.mxu1 %v2782_v31 }
 0x980   :  { %2497 = vmatprep.subr.bf16.mxu1 %v2618_v0 }
 0xa4d   :  { %v1240_v39 = vpop.f32.mrb[10].mxu1 }
 0xa4e   :  { %v1244_v41 = vmul.f32 %v1240_v39, %v2775_v23  ;;  %v2302_v42 = vpop.f32.mrb[11].mxu1 }
 0xa50   :  { %v1245_v43 = vadd.f32 %v1244_v41, %v1170_v40 }
 0xa52   :  { %2312 = vmatmul.mubr.msk.f32.vlgmr.msra.gmra.mrb[12].mxu0 %vm302_vm2, %v1245_v43  ;;  %v1246_v49 = vmul.f32 %v1245_v43, %v2787_v35 }
 0xa53   :  { %2333 = vmatprep.mubr.msk.f32.mxu0 %vm2619_vm0, %v2620_v1  ;;  %2493 = vmatpush3.bf16.msra.mxu0 %v2492_v48 }
 0xa54   :  { %2494 = vmatprep.subr.bf16.mxu0 %v2618_v0 }
 0xa57   :  { %2496 = vmatpush3.bf16.msra.mxu0 %v2495_v55 }
 0xa58   :  { %2503 = vmatprep.subr.bf16.mxu0 %v2618_v0 }
 0xb25   :  { %v1316_v21 = vpop.f32.mrb[12].mxu0 }
 0xb26   :  { %v1320_v50 = vmul.f32 %v1316_v21, %v2789_v36  ;;  %v2313_v51 = vpop.f32.mrb[13].mxu0 }
 0xb28   :  { %v1321_v52 = vadd.f32 %v1320_v50, %v1246_v49 }
 0xb2a   :  { %2323 = vmatmul.mubr.msk.f32.vlgmr.msra.gmra.mrb[12].mxu1 %vm302_vm2, %v1321_v52  ;;  %v1322_v57 = vmul.f32 %v1321_v52, %v2801_v45 }
 0xb2b   :  { %2499 = vmatpush3.bf16.msra.mxu1 %v2701_v9  ;;  %2344 = vmatprep.mubr.msk.f32.mxu1 %vm2619_vm0, %v2620_v1 }
 0xb2c   :  { %2500 = vmatprep.subr.bf16.mxu1 %v2618_v0 }
 0xb2f   :  { %2502 = vmatpush3.bf16.msra.mxu1 %v2710_v14 }
 0xb30   :  { %2509 = vmatprep.subr.bf16.mxu1 %v2618_v0 }
 0xbfd   :  { %v1392_v56 = vpop.f32.mrb[12].mxu1 }
 0xbfe   :  { %v1396_v9 = vmul.f32 %v1392_v56, %v2803_v46  ;;  %v2324_v59 = vpop.f32.mrb[13].mxu1 }
 0xc00   :  { %v1397_v60 = vadd.f32 %v1396_v9, %v1322_v57 }
 0xc02   :  { %2334 = vmatmul.mubr.msk.f32.vlgmr.msra.gmra.mrb[14].mxu0 %vm302_vm2, %v1397_v60 }
 0xc03   :  { %2505 = vmatpush3.bf16.msra.mxu0 %v2743_v58  ;;  %2355 = vmatprep.mubr.msk.f32.mxu0 %vm2619_vm0, %v2620_v1 }
 0xc04   :  { %2506 = vmatprep.subr.bf16.mxu0 %v2618_v0 }
 0xc07   :  { %2508 = vmatpush3.bf16.msra.mxu0 %v2747_v61 }
 0xc08   :  { %2515 = vmatprep.subr.bf16.mxu0 %v2618_v0 }
 0xcd5   :  { %v1472_v14 = vpop.f32.mrb[14].mxu0 }
 0xcd6   :  { %v2335_v18 = vpop.f32.mrb[15].mxu0  ;;  %2345 = vmatmul.mubr.msk.f32.vlgmr.msra.gmra.mrb[14].mxu1 %vm302_vm2, %v1472_v14  ;;  %v1476_v61 = vmul.f32 %v1472_v14, %v2755_v6 }
 0xcd7   :  { %2511 = vmatpush3.bf16.msra.mxu1 %v2751_v3  ;;  %2366 = vmatprep.mubr.msk.f32.mxu1 %vm2619_vm0, %v2620_v1 }
 0xcd8   :  { %2512 = vmatprep.subr.bf16.mxu1 %v2618_v0 }
 0xcdb   :  { %2514 = vmatpush3.bf16.msra.mxu1 %v2765_v16 }
 0xcdc   :  { %2521 = vmatprep.subr.bf16.mxu1 %v2618_v0 }
 0xda9   :  { %v1546_v58 = vpop.f32.mrb[14].mxu1 }
 0xdaa   :  { %v1550_v62 = vmul.f32 %v1546_v58, %v2757_v7  ;;  %v2346_v63 = vpop.f32.mrb[15].mxu1 }
 0xdac   :  { %v1551_v2 = vadd.f32 %v1550_v62, %v1476_v61 }
 0xdae   :  { %2356 = vmatmul.mubr.msk.f32.vlgmr.msra.gmra.mrb[16].mxu0 %vm302_vm2, %v1551_v2  ;;  %v1552_v6 = vmul.f32 %v1551_v2, %v2773_v22 }
 0xdaf   :  { %2517 = vmatpush3.bf16.msra.mxu0 %v2769_v15  ;;  %2377 = vmatprep.mubr.msk.f32.mxu0 %vm2619_vm0, %v2620_v1  ;;  %v1781_v15 = vld [vmem:[#allocation4 + $0x60] sm:$0xff] }
 0xdb0   :  { %2518 = vmatprep.subr.bf16.mxu0 %v2618_v0  ;;  %v2522_v8 = vpack.c.bf16 %v1782_v5, %v1781_v15 }
 0xdb3   :  { %2520 = vmatpush3.bf16.msra.mxu0 %v2782_v31 }
 0xdb4   :  { %2527 = vmatprep.subr.bf16.mxu0 %v2618_v0 }
 0xe81   :  { %v1622_v3 = vpop.f32.mrb[16].mxu0 }
 0xe82   :  { %v1626_v7 = vmul.f32 %v1622_v3, %v2775_v23  ;;  %v2357_v16 = vpop.f32.mrb[17].mxu0 }
 0xe84   :  { %v1627_v4 = vadd.f32 %v1626_v7, %v1552_v6 }
 0xe86   :  { %2367 = vmatmul.mubr.msk.f32.vlgmr.msra.gmra.mrb[16].mxu1 %vm302_vm2, %v1627_v4  ;;  %v1628_v10 = vmul.f32 %v1627_v4, %v2787_v35  ;;  %v1860_v35 = vld [vmem:[%s2956_s4 + $0x8] sm:$0xff] }
 0xe87   :  { %2388 = vmatprep.mubr.msk.f32.mxu1 %vm2619_vm0, %v2620_v1  ;;  %2523 = vmatpush3.bf16.msra.mxu1 %v2522_v8 }
 0xe88   :  { %2524 = vmatprep.subr.bf16.mxu1 %v2618_v0 }
 0xe8b   :  { %2526 = vmatpush3.bf16.msra.mxu1 %v2525_v17 }
 0xe8c   :  { %2402 = vmatprep.subr.mxu1 %v2620_v1 }
 0xf59   :  { %v1698_v31 = vpop.f32.mrb[16].mxu1 }
 0xf5a   :  { %v1702_v22 = vmul.f32 %v1698_v31, %v2789_v36  ;;  %v2368_v11 = vpop.f32.mrb[17].mxu1  ;;  %v2528_v36 = vpack.c.bf16 %v1860_v35, %v1859_v19 }
 0xf5c   :  { %v1703_v23 = vadd.f32 %v1702_v22, %v1628_v10 }
 0xf5e   :  { %2378 = vmatmul.mubr.msk.f32.vlgmr.msra.gmra.mrb[18].mxu0 %vm302_vm2, %v1703_v23  ;;  %v1704_v24 = vmul.f32 %v1703_v23, %v2801_v45  ;;  %v1937_v45 = vld [vmem:[%s2957_s5] sm:$0xf] }
 0xf5f   :  { %2399 = vmatprep.mubr.msk.f32.mxu0 %vm2619_vm0, %v2620_v1  ;;  %2529 = vmatpush3.bf16.msra.mxu0 %v2528_v36 }
 0xf60   :  { %2530 = vmatprep.subr.bf16.mxu0 %v2618_v0  ;;  %v1862_v0 = vld [vmem:[%s2956_s4 + $0x18] sm:$0xff] }
 0xf61   :  { %v2531_v29 = vpack.c.bf16 %v1862_v0, %v1861_v28 }
 0xf63   :  { %2532 = vmatpush3.bf16.msra.mxu0 %v2531_v29 }
0x1031   :  { %v1774_v20 = vpop.f32.mrb[18].mxu0 }
0x1032   :  { %v1778_v25 = vmul.f32 %v1774_v20, %v2803_v46  ;;  %v2379_v26 = vpop.f32.mrb[19].mxu0 }
0x1034   :  { %v1779_v27 = vadd.f32 %v1778_v25, %v1704_v24 }
0x1036   :  { %2389 = vmatmul.mubr.msk.f32.vlgmr.msra.gmra.mrb[18].mxu1 %vm302_vm2, %v1779_v27 }
0x1037   :  { %2404 = vmatprep.mubr.msk.f32.mxu1 %vm2619_vm0, %v2620_v1  ;;  %2403 = vmatpush3.msk.msra.mxu1 %vm1949_vm5, %v1937_v45  ;;  %vm1945_vm0 = vcmask 31744  }
0x1109   :  { %v1854_v46 = vpop.f32.mrb[18].mxu1 }
0x110a   :  { %v1858_v30 = vmul.f32 %v1854_v46, %v1854_v46  ;;  %v2390_v32 = vpop.f32.mrb[19].mxu1 }
0x110c   :  { %2400 = vmatmul.mubr.msk.f32.vlgmr.msra.gmra.mrb[20].mxu0 %vm302_vm2, %v1858_v30 }
0x11df   :  { %v1932_v1 = vpop.f32.mrb[20].mxu0 }
0x11e0   :  { %v1936_v33 = vmax.f32 %v1932_v1, 0.0  ;;  %v2401_v34 = vpop.f32.mrb[21].mxu0 }
0x11e2   :  { %2405 = vmatmul.mubr.msk.f32.vlgmr.msra.gmra.mrb[20].mxu1 %vm1945_vm0, %v1936_v33 }
0x12b5   :  { %v2019_v38 = vpop.f32.mrb[20].mxu1 }
0x12b6   :  { %v2020_v39 = vadd.f32 %v2061_v37, %v2019_v38  ;;  %v2406_v40 = vpop.f32.mrb[21].mxu1 }
0x12b8   :  { %2024 = vst.msk [vmem:[%s2959_s7] sm:$0xff] %vm2023_vm6, %v2020_v39 }
0x12b9   :  { %2029 = vsyncpa [#allocation3], 1 }
0x12ba   :  { %2030 = vsyncpa [#allocation5], 1 }

</bundles_post_ra>
